<compile_context>
chip_gen: v6e
topology: v6e:2x2x1
jax: 0.10.0
libtpu: 0.0.40
codegen_flags: <defaults>
</compile_context>

<pallas_src>
import numpy as np

import jax
import jax.numpy as jnp
from jax import lax
from jax.experimental import pallas as pl
from jax.experimental.pallas import tpu as pltpu


# --------------------------------------------------------------------------
# Pallas kernel: ALL LSTM layers, full sequence.  Grid = (n_layers,).
# --------------------------------------------------------------------------
def _fused_lstm_kernel(x_ref, wih_ref, whh_ref, b_ref,
                       h_ref, c_ref, act_sc, gx_sc):
    layer = pl.program_id(0)
    TB, K = act_sc.shape                  # T*Bp, padded input width max(E, H)
    Bp, H = h_ref.shape                   # padded batch, hidden
    T = TB // Bp

    # Layer 0's input is the (padded) embedded sequence; layers > 0 read the
    # previous layer's hidden states already sitting in act_sc (scratch
    # persists across the sequential layer grid).
    @pl.when(layer == 0)
    def _():
        act_sc[...] = x_ref[...]

    # Hoisted input projection for this layer: ONE (T*Bp, K) @ (K, 4H) matmul
    # plus one dense, sublane-aligned store.  W_ih stacks are zero-padded to K
    # rows so every layer shares this exact code path.
    gx_sc[...] = jnp.dot(act_sc[...], wih_ref[layer],
                         preferred_element_type=jnp.float32) + b_ref[layer]

    whh = whh_ref[layer]                  # (H, 4H); small, lives in vregs

    # ---- recurrence: h/c carried as loop values, written to refs once ----
    def step(t, carry):
        h, c = carry
        off = pl.multiple_of(t * Bp, 8)
        gates = gx_sc[pl.ds(off, Bp), :] + jnp.dot(
            h, whh, preferred_element_type=jnp.float32)          # (Bp, 4H)
        sg = jax.nn.sigmoid(gates)        # full-row sigmoid covers [i, f, o]
        i_g = sg[:, 0 * H:1 * H]
        f_g = sg[:, 1 * H:2 * H]
        o_g = sg[:, 2 * H:3 * H]
        g_g = jnp.tanh(gates[:, 3 * H:4 * H])   # gate order is [i, f, o, g]
        c_new = f_g * c + i_g * g_g
        h_new = o_g * jnp.tanh(c_new)
        # This layer's hidden output becomes the next layer's input.
        if K == H:
            act_sc[pl.ds(off, Bp), :] = h_new
        else:
            # Extra columns [H:K] multiply zero-padded W_ih rows next layer.
            act_sc[pl.ds(off, Bp), 0:H] = h_new
        return (h_new, c_new)

    h0 = jnp.zeros((Bp, H), jnp.float32)
    c0 = jnp.zeros((Bp, H), jnp.float32)
    h_f, c_f = lax.fori_loop(0, T, step, (h0, c0), unroll=True)
    h_ref[...] = h_f
    c_ref[...] = c_f


# --------------------------------------------------------------------------
# ByteEncoder parameters (PyTorch-style init), one-time prep, and forward.
# --------------------------------------------------------------------------
def init_byte_encoder_params(key, input_dim, emb_dim, hidden_dim, n_layers):
    params = {}
    key, k_emb = jax.random.split(key)
    params["embedding"] = jax.random.normal(
        k_emb, (input_dim, emb_dim), jnp.float32)
    bound = 1.0 / np.sqrt(hidden_dim)
    layers = []
    for layer in range(n_layers):
        in_dim = emb_dim if layer == 0 else hidden_dim
        key, k1, k2, k3, k4 = jax.random.split(key, 5)
        layers.append(dict(
            w_ih=jax.random.uniform(k1, (4 * hidden_dim, in_dim),
                                    jnp.float32, -bound, bound),
            w_hh=jax.random.uniform(k2, (4 * hidden_dim, hidden_dim),
                                    jnp.float32, -bound, bound),
            b_ih=jax.random.uniform(k3, (4 * hidden_dim,),
                                    jnp.float32, -bound, bound),
            b_hh=jax.random.uniform(k4, (4 * hidden_dim,),
                                    jnp.float32, -bound, bound),
        ))
    params["lstm"] = layers
    return params


def _prep_layer(w_ih, w_hh, b_ih, b_hh, perm, K):
    """PyTorch (4H,IN)/(4H,H)/(4H,) -> (K,4H)/(H,4H)/(1,4H), gates [i,f,o,g]."""
    wih_t = jnp.transpose(w_ih).astype(jnp.float32)[:, perm]
    wih_t = jnp.pad(wih_t, ((0, K - wih_t.shape[0]), (0, 0)))
    whh_t = jnp.transpose(w_hh).astype(jnp.float32)[:, perm]
    bias = (b_ih + b_hh).astype(jnp.float32)[perm].reshape(1, -1)
    return wih_t, whh_t, bias


def prepare_byte_encoder(params):
    """One-time weight prep (hoisted out of the per-call forward)."""
    layers = params["lstm"]
    H = layers[0]["w_hh"].shape[1]
    E = layers[0]["w_ih"].shape[1]
    K = max(E, H)
    # Gate reorder [i, f, g, o] -> [i, f, o, g]: pure weight prep, zero runtime.
    perm = np.concatenate([np.arange(0, H), np.arange(H, 2 * H),
                           np.arange(3 * H, 4 * H), np.arange(2 * H, 3 * H)])
    wih_s, whh_s, b_s = [], [], []
    for lp in layers:
        wih_t, whh_t, bias = _prep_layer(lp["w_ih"], lp["w_hh"],
                                         lp["b_ih"], lp["b_hh"], perm, K)
        wih_s.append(wih_t)
        whh_s.append(whh_t)
        b_s.append(bias)
    return dict(
        embedding=params["embedding"].astype(jnp.float32),
        wih=jnp.stack(wih_s, 0),       # (L, K, 4H)
        whh=jnp.stack(whh_s, 0),       # (L, H, 4H)
        bias=jnp.stack(b_s, 0),        # (L, 1, 4H)
    )


@jax.jit
def byte_encoder_forward(prepped, src):
    """src: (B, T) int32 token ids.  Returns (hidden, cell): (n_layers, B, H)."""
    wih, whh, bias = prepped["wih"], prepped["whh"], prepped["bias"]
    L, K, G = wih.shape
    H = whh.shape[1]
    E = prepped["embedding"].shape[1]

    # Embedding gather (plain-JAX glue) + dropout (identity at inference).
    # TODO(synk): training-mode dropout is not implemented (module is in eval).
    embedded = jnp.take(prepped["embedding"], src, axis=0)          # (B, T, E)
    B, T = src.shape

    # Pad batch to a sublane multiple and features to K so all ops are dense.
    Bp = max(8, ((B + 7) // 8) * 8)
    x = jnp.transpose(embedded, (1, 0, 2)).astype(jnp.float32)      # (T, B, E)
    x = jnp.pad(x, ((0, 0), (0, Bp - B), (0, K - E)))               # (T, Bp, K)
    x2d = x.reshape(T * Bp, K)

    hidden, cell = pl.pallas_call(
        _fused_lstm_kernel,
        out_shape=(jax.ShapeDtypeStruct((L, Bp, H), jnp.float32),
                   jax.ShapeDtypeStruct((L, Bp, H), jnp.float32)),
        grid_spec=pltpu.PrefetchScalarGridSpec(
            num_scalar_prefetch=0,
            grid=(L,),
            in_specs=[
                # Embedded sequence: resident across all layers.
                pl.BlockSpec((T * Bp, K), lambda l: (0, 0)),
                # Full weight/bias stacks resident in VMEM (no per-layer DMA).
                pl.BlockSpec((L, K, G), lambda l: (0, 0, 0)),
                pl.BlockSpec((L, H, G), lambda l: (0, 0, 0)),
                pl.BlockSpec((L, 1, G), lambda l: (0, 0, 0)),
            ],
            out_specs=(
                pl.BlockSpec((None, Bp, H), lambda l: (l, 0, 0)),   # hidden[l]
                pl.BlockSpec((None, Bp, H), lambda l: (l, 0, 0)),   # cell[l]
            ),
            scratch_shapes=[pltpu.VMEM((T * Bp, K), jnp.float32),   # layer acts
                            pltpu.VMEM((T * Bp, G), jnp.float32)],  # gate inputs
        ),
        compiler_params=pltpu.CompilerParams(
            dimension_semantics=("arbitrary",)),    # layers are sequential
    )(x2d, wih, whh, bias)

    return hidden[:, :B, :], cell[:, :B, :]


# --------------------------------------------------------------------------
# Pure-JAX reference LSTM (PyTorch gate order) for a correctness check.
# --------------------------------------------------------------------------
def _lstm_layer_ref(x_tm, w_ih, w_hh, b_ih, b_hh):
    T, B, _ = x_tm.shape
    H = w_hh.shape[1]

    def step(carry, x_t):
        h, c = carry
        gates = x_t @ w_ih.T + h @ w_hh.T + b_ih + b_hh
        i_g = jax.nn.sigmoid(gates[:, 0 * H:1 * H])
        f_g = jax.nn.sigmoid(gates[:, 1 * H:2 * H])
        g_g = jnp.tanh(gates[:, 2 * H:3 * H])
        o_g = jax.nn.sigmoid(gates[:, 3 * H:4 * H])
        c_new = f_g * c + i_g * g_g
        h_new = o_g * jnp.tanh(c_new)
        return (h_new, c_new), h_new

    h0 = jnp.zeros((B, H), jnp.float32)
    c0 = jnp.zeros((B, H), jnp.float32)
    (h_f, c_f), outs = lax.scan(step, (h0, c0), x_tm)
    return outs, h_f, c_f


def byte_encoder_forward_ref(params, src):
    embedded = jnp.take(params["embedding"], src, axis=0)
    x_tm = jnp.transpose(embedded, (1, 0, 2))
    hiddens, cells = [], []
    layer_in = x_tm
    for lp in params["lstm"]:
        layer_in, h_f, c_f = _lstm_layer_ref(
            layer_in, lp["w_ih"], lp["w_hh"], lp["b_ih"], lp["b_hh"])
        hiddens.append(h_f)
        cells.append(c_f)
    return jnp.stack(hiddens, 0), jnp.stack(cells, 0)


# --------------------------------------------------------------------------
if __name__ == "__main__":
    INPUT_DIM = 256    # byte vocabulary
    EMB_DIM = 32
    HIDDEN_DIM = 32
    N_LAYERS = 2
    DROPOUT = 0.1      # nn.Dropout is identity at inference time
    B, T = 2, 8

    key = jax.random.PRNGKey(0)
    key, k_params, k_src = jax.random.split(key, 3)
    params = init_byte_encoder_params(
        k_params, INPUT_DIM, EMB_DIM, HIDDEN_DIM, N_LAYERS)
    src = jax.random.randint(k_src, (B, T), 0, INPUT_DIM, dtype=jnp.int32)

    prepped = prepare_byte_encoder(params)          # one-time weight prep
    hidden, cell = byte_encoder_forward(prepped, src)
    hidden = jax.block_until_ready(hidden)
    cell = jax.block_until_ready(cell)

    # Correctness check against the pure-JAX reference.
    hidden_ref, cell_ref = byte_encoder_forward_ref(params, src)
    np.testing.assert_allclose(np.asarray(hidden), np.asarray(hidden_ref),
                               rtol=1e-5, atol=1e-5)
    np.testing.assert_allclose(np.asarray(cell), np.asarray(cell_ref),
                               rtol=1e-5, atol=1e-5)

    assert hidden.shape == (N_LAYERS, B, HIDDEN_DIM)
    assert cell.shape == (N_LAYERS, B, HIDDEN_DIM)
    print("KERNEL_OK")
</pallas_src>

<mosaic_0001>
module attributes {stable_mosaic.version = 11 : i64} {
  func.func @_fused_lstm_kernel(%arg0: i32, %arg1: memref<64x32xf32, #tpu.memory_space<vmem>>, %arg2: memref<2x32x128xf32, #tpu.memory_space<vmem>>, %arg3: memref<2x32x128xf32, #tpu.memory_space<vmem>>, %arg4: memref<2x1x128xf32, #tpu.memory_space<vmem>>, %arg5: memref<1x8x32xf32, #tpu.memory_space<vmem>>, %arg6: memref<1x8x32xf32, #tpu.memory_space<vmem>>, %arg7: memref<64x32xf32, #tpu.memory_space<vmem>>, %arg8: memref<64x128xf32, #tpu.memory_space<vmem>>) attributes {dimension_semantics = [#tpu.dimension_semantics<arbitrary>], iteration_bounds = array<i64: 2>, scalar_prefetch = 0 : i64, scratch_operands = 2 : i64, tpu.core_type = #tpu.core_type<tc>, window_params = [{pipeline_mode = #tpu.pipeline_mode<synchronous>, transform_indices = @transform_0, window_bounds = array<i64: 64, 32>}, {pipeline_mode = #tpu.pipeline_mode<synchronous>, transform_indices = @transform_1, window_bounds = array<i64: 2, 32, 128>}, {pipeline_mode = #tpu.pipeline_mode<synchronous>, transform_indices = @transform_2, window_bounds = array<i64: 2, 32, 128>}, {pipeline_mode = #tpu.pipeline_mode<synchronous>, transform_indices = @transform_3, window_bounds = array<i64: 2, 1, 128>}, {transform_indices = @transform_4, window_bounds = array<i64: 1, 8, 32>}, {transform_indices = @transform_5, window_bounds = array<i64: 1, 8, 32>}]} {
    %c0_i32 = arith.constant 0 : i32
    %0 = arith.cmpi eq, %arg0, %c0_i32 : i32
    %1 = arith.extui %0 : i1 to i32
    %c0_i32_0 = arith.constant 0 : i32
    %2 = arith.cmpi ne, %1, %c0_i32_0 : i32
    scf.if %2 {
      %c0_59 = arith.constant 0 : index
      %c0_60 = arith.constant 0 : index
      %209 = vector.load %arg1[%c0_59, %c0_60] : memref<64x32xf32, #tpu.memory_space<vmem>>, vector<64x32xf32>
      %c0_61 = arith.constant 0 : index
      %c0_62 = arith.constant 0 : index
      %210 = vector.load %arg7[%c0_61, %c0_62] : memref<64x32xf32, #tpu.memory_space<vmem>>, vector<64x32xf32>
      tpu.vector_store %arg7[%c0_61, %c0_62], %209 {strides = array<i32>} : memref<64x32xf32, #tpu.memory_space<vmem>>, vector<64x32xf32>,
    } else {
    }
    %c0 = arith.constant 0 : index
    %c0_1 = arith.constant 0 : index
    %3 = vector.load %arg7[%c0, %c0_1] : memref<64x32xf32, #tpu.memory_space<vmem>>, vector<64x32xf32>
    %4 = arith.index_cast %arg0 : i32 to index
    %c0_2 = arith.constant 0 : index
    %c0_3 = arith.constant 0 : index
    %5 = vector.load %arg2[%4, %c0_2, %c0_3] : memref<2x32x128xf32, #tpu.memory_space<vmem>>, vector<1x32x128xf32>
    %6 = vector.shape_cast %5 : vector<1x32x128xf32> to vector<32x128xf32>
    %cst = arith.constant dense<0.000000e+00> : vector<64x128xf32>
    %7 = tpu.matmul %3, %6, %cst {dimension_numbers = #tpu.dot_dimension_numbers<[1], [0], [0], [1], [0, 0, 1, 1], [], []>} : vector<64x32xf32>, vector<32x128xf32>, vector<64x128xf32> -> vector<64x128xf32>
    %8 = arith.index_cast %arg0 : i32 to index
    %c0_4 = arith.constant 0 : index
    %c0_5 = arith.constant 0 : index
    %9 = vector.load %arg4[%8, %c0_4, %c0_5] : memref<2x1x128xf32, #tpu.memory_space<vmem>>, vector<1x1x128xf32>
    %10 = vector.shape_cast %9 : vector<1x1x128xf32> to vector<1x128xf32>
    %11 = vector.broadcast %10 : vector<1x128xf32> to vector<64x128xf32>
    %12 = arith.addf %7, %11 : vector<64x128xf32>
    %c0_6 = arith.constant 0 : index
    %c0_7 = arith.constant 0 : index
    %13 = vector.load %arg8[%c0_6, %c0_7] : memref<64x128xf32, #tpu.memory_space<vmem>>, vector<64x128xf32>
    tpu.vector_store %arg8[%c0_6, %c0_7], %12 {strides = array<i32>} : memref<64x128xf32, #tpu.memory_space<vmem>>, vector<64x128xf32>,
    %14 = arith.index_cast %arg0 : i32 to index
    %c0_8 = arith.constant 0 : index
    %c0_9 = arith.constant 0 : index
    %15 = vector.load %arg3[%14, %c0_8, %c0_9] : memref<2x32x128xf32, #tpu.memory_space<vmem>>, vector<1x32x128xf32>
    %16 = vector.shape_cast %15 : vector<1x32x128xf32> to vector<32x128xf32>
    %cst_10 = arith.constant 0.000000e+00 : f32
    %17 = vector.broadcast %cst_10 : f32 to vector<8x32xf32>
    %cst_11 = arith.constant 0.000000e+00 : f32
    %18 = vector.broadcast %cst_11 : f32 to vector<8x32xf32>
    %c0_i32_12 = arith.constant 0 : i32
    %c8_i32 = arith.constant 8 : i32
    %19 = arith.muli %c0_i32_12, %c8_i32 : i32
    %20 = tpu.assume_multiple %19, 8 : i32
    %21 = arith.index_cast %20 : i32 to index
    %c0_13 = arith.constant 0 : index
    %22 = vector.load %arg8[%21, %c0_13] : memref<64x128xf32, #tpu.memory_space<vmem>>, vector<8x128xf32>
    %cst_14 = arith.constant dense<0.000000e+00> : vector<8x128xf32>
    %23 = tpu.matmul %17, %16, %cst_14 {dimension_numbers = #tpu.dot_dimension_numbers<[1], [0], [0], [1], [0, 0, 1, 1], [], []>} : vector<8x32xf32>, vector<32x128xf32>, vector<8x128xf32> -> vector<8x128xf32>
    %24 = arith.addf %22, %23 : vector<8x128xf32>
    %25 = arith.negf %24 : vector<8x128xf32>
    %26 = math.exp %25 : vector<8x128xf32>
    %cst_15 = arith.constant 1.000000e+00 : f32
    %27 = vector.broadcast %cst_15 : f32 to vector<8x128xf32>
    %28 = arith.addf %27, %26 : vector<8x128xf32>
    %29 = arith.divf %27, %28 : vector<8x128xf32>
    %30 = vector.extract_strided_slice %29 {offsets = [0, 0], sizes = [8, 32], strides = [1, 1]} : vector<8x128xf32> to vector<8x32xf32>
    %31 = vector.extract_strided_slice %29 {offsets = [0, 32], sizes = [8, 32], strides = [1, 1]} : vector<8x128xf32> to vector<8x32xf32>
    %32 = vector.extract_strided_slice %29 {offsets = [0, 64], sizes = [8, 32], strides = [1, 1]} : vector<8x128xf32> to vector<8x32xf32>
    %33 = vector.extract_strided_slice %24 {offsets = [0, 96], sizes = [8, 32], strides = [1, 1]} : vector<8x128xf32> to vector<8x32xf32>
    %34 = math.tanh %33 : vector<8x32xf32>
    %35 = arith.mulf %31, %18 : vector<8x32xf32>
    %36 = arith.mulf %30, %34 : vector<8x32xf32>
    %37 = arith.addf %35, %36 : vector<8x32xf32>
    %38 = math.tanh %37 : vector<8x32xf32>
    %39 = arith.mulf %32, %38 : vector<8x32xf32>
    %40 = arith.index_cast %20 : i32 to index
    %c0_16 = arith.constant 0 : index
    %41 = vector.load %arg7[%40, %c0_16] : memref<64x32xf32, #tpu.memory_space<vmem>>, vector<8x32xf32>
    tpu.vector_store %arg7[%40, %c0_16], %39 {strides = array<i32>} : memref<64x32xf32, #tpu.memory_space<vmem>>, vector<8x32xf32>,
    %c1_i32 = arith.constant 1 : i32
    %c8_i32_17 = arith.constant 8 : i32
    %42 = arith.muli %c1_i32, %c8_i32_17 : i32
    %43 = tpu.assume_multiple %42, 8 : i32
    %44 = arith.index_cast %43 : i32 to index
    %c0_18 = arith.constant 0 : index
    %45 = vector.load %arg8[%44, %c0_18] : memref<64x128xf32, #tpu.memory_space<vmem>>, vector<8x128xf32>
    %cst_19 = arith.constant dense<0.000000e+00> : vector<8x128xf32>
    %46 = tpu.matmul %39, %16, %cst_19 {dimension_numbers = #tpu.dot_dimension_numbers<[1], [0], [0], [1], [0, 0, 1, 1], [], []>} : vector<8x32xf32>, vector<32x128xf32>, vector<8x128xf32> -> vector<8x128xf32>
    %47 = arith.addf %45, %46 : vector<8x128xf32>
    %48 = arith.negf %47 : vector<8x128xf32>
    %49 = math.exp %48 : vector<8x128xf32>
    %cst_20 = arith.constant 1.000000e+00 : f32
    %50 = vector.broadcast %cst_20 : f32 to vector<8x128xf32>
    %51 = arith.addf %50, %49 : vector<8x128xf32>
    %52 = arith.divf %50, %51 : vector<8x128xf32>
    %53 = vector.extract_strided_slice %52 {offsets = [0, 0], sizes = [8, 32], strides = [1, 1]} : vector<8x128xf32> to vector<8x32xf32>
    %54 = vector.extract_strided_slice %52 {offsets = [0, 32], sizes = [8, 32], strides = [1, 1]} : vector<8x128xf32> to vector<8x32xf32>
    %55 = vector.extract_strided_slice %52 {offsets = [0, 64], sizes = [8, 32], strides = [1, 1]} : vector<8x128xf32> to vector<8x32xf32>
    %56 = vector.extract_strided_slice %47 {offsets = [0, 96], sizes = [8, 32], strides = [1, 1]} : vector<8x128xf32> to vector<8x32xf32>
    %57 = math.tanh %56 : vector<8x32xf32>
    %58 = arith.mulf %54, %37 : vector<8x32xf32>
    %59 = arith.mulf %53, %57 : vector<8x32xf32>
    %60 = arith.addf %58, %59 : vector<8x32xf32>
    %61 = math.tanh %60 : vector<8x32xf32>
    %62 = arith.mulf %55, %61 : vector<8x32xf32>
    %63 = arith.index_cast %43 : i32 to index
    %c0_21 = arith.constant 0 : index
    %64 = vector.load %arg7[%63, %c0_21] : memref<64x32xf32, #tpu.memory_space<vmem>>, vector<8x32xf32>
    tpu.vector_store %arg7[%63, %c0_21], %62 {strides = array<i32>} : memref<64x32xf32, #tpu.memory_space<vmem>>, vector<8x32xf32>,
    %c2_i32 = arith.constant 2 : i32
    %c8_i32_22 = arith.constant 8 : i32
    %65 = arith.muli %c2_i32, %c8_i32_22 : i32
    %66 = tpu.assume_multiple %65, 8 : i32
    %67 = arith.index_cast %66 : i32 to index
    %c0_23 = arith.constant 0 : index
    %68 = vector.load %arg8[%67, %c0_23] : memref<64x128xf32, #tpu.memory_space<vmem>>, vector<8x128xf32>
    %cst_24 = arith.constant dense<0.000000e+00> : vector<8x128xf32>
    %69 = tpu.matmul %62, %16, %cst_24 {dimension_numbers = #tpu.dot_dimension_numbers<[1], [0], [0], [1], [0, 0, 1, 1], [], []>} : vector<8x32xf32>, vector<32x128xf32>, vector<8x128xf32> -> vector<8x128xf32>
    %70 = arith.addf %68, %69 : vector<8x128xf32>
    %71 = arith.negf %70 : vector<8x128xf32>
    %72 = math.exp %71 : vector<8x128xf32>
    %cst_25 = arith.constant 1.000000e+00 : f32
    %73 = vector.broadcast %cst_25 : f32 to vector<8x128xf32>
    %74 = arith.addf %73, %72 : vector<8x128xf32>
    %75 = arith.divf %73, %74 : vector<8x128xf32>
    %76 = vector.extract_strided_slice %75 {offsets = [0, 0], sizes = [8, 32], strides = [1, 1]} : vector<8x128xf32> to vector<8x32xf32>
    %77 = vector.extract_strided_slice %75 {offsets = [0, 32], sizes = [8, 32], strides = [1, 1]} : vector<8x128xf32> to vector<8x32xf32>
    %78 = vector.extract_strided_slice %75 {offsets = [0, 64], sizes = [8, 32], strides = [1, 1]} : vector<8x128xf32> to vector<8x32xf32>
    %79 = vector.extract_strided_slice %70 {offsets = [0, 96], sizes = [8, 32], strides = [1, 1]} : vector<8x128xf32> to vector<8x32xf32>
    %80 = math.tanh %79 : vector<8x32xf32>
    %81 = arith.mulf %77, %60 : vector<8x32xf32>
    %82 = arith.mulf %76, %80 : vector<8x32xf32>
    %83 = arith.addf %81, %82 : vector<8x32xf32>
    %84 = math.tanh %83 : vector<8x32xf32>
    %85 = arith.mulf %78, %84 : vector<8x32xf32>
    %86 = arith.index_cast %66 : i32 to index
    %c0_26 = arith.constant 0 : index
    %87 = vector.load %arg7[%86, %c0_26] : memref<64x32xf32, #tpu.memory_space<vmem>>, vector<8x32xf32>
    tpu.vector_store %arg7[%86, %c0_26], %85 {strides = array<i32>} : memref<64x32xf32, #tpu.memory_space<vmem>>, vector<8x32xf32>,
    %c3_i32 = arith.constant 3 : i32
    %c8_i32_27 = arith.constant 8 : i32
    %88 = arith.muli %c3_i32, %c8_i32_27 : i32
    %89 = tpu.assume_multiple %88, 8 : i32
    %90 = arith.index_cast %89 : i32 to index
    %c0_28 = arith.constant 0 : index
    %91 = vector.load %arg8[%90, %c0_28] : memref<64x128xf32, #tpu.memory_space<vmem>>, vector<8x128xf32>
    %cst_29 = arith.constant dense<0.000000e+00> : vector<8x128xf32>
    %92 = tpu.matmul %85, %16, %cst_29 {dimension_numbers = #tpu.dot_dimension_numbers<[1], [0], [0], [1], [0, 0, 1, 1], [], []>} : vector<8x32xf32>, vector<32x128xf32>, vector<8x128xf32> -> vector<8x128xf32>
    %93 = arith.addf %91, %92 : vector<8x128xf32>
    %94 = arith.negf %93 : vector<8x128xf32>
    %95 = math.exp %94 : vector<8x128xf32>
    %cst_30 = arith.constant 1.000000e+00 : f32
    %96 = vector.broadcast %cst_30 : f32 to vector<8x128xf32>
    %97 = arith.addf %96, %95 : vector<8x128xf32>
    %98 = arith.divf %96, %97 : vector<8x128xf32>
    %99 = vector.extract_strided_slice %98 {offsets = [0, 0], sizes = [8, 32], strides = [1, 1]} : vector<8x128xf32> to vector<8x32xf32>
    %100 = vector.extract_strided_slice %98 {offsets = [0, 32], sizes = [8, 32], strides = [1, 1]} : vector<8x128xf32> to vector<8x32xf32>
    %101 = vector.extract_strided_slice %98 {offsets = [0, 64], sizes = [8, 32], strides = [1, 1]} : vector<8x128xf32> to vector<8x32xf32>
    %102 = vector.extract_strided_slice %93 {offsets = [0, 96], sizes = [8, 32], strides = [1, 1]} : vector<8x128xf32> to vector<8x32xf32>
    %103 = math.tanh %102 : vector<8x32xf32>
    %104 = arith.mulf %100, %83 : vector<8x32xf32>
    %105 = arith.mulf %99, %103 : vector<8x32xf32>
    %106 = arith.addf %104, %105 : vector<8x32xf32>
    %107 = math.tanh %106 : vector<8x32xf32>
    %108 = arith.mulf %101, %107 : vector<8x32xf32>
    %109 = arith.index_cast %89 : i32 to index
    %c0_31 = arith.constant 0 : index
    %110 = vector.load %arg7[%109, %c0_31] : memref<64x32xf32, #tpu.memory_space<vmem>>, vector<8x32xf32>
    tpu.vector_store %arg7[%109, %c0_31], %108 {strides = array<i32>} : memref<64x32xf32, #tpu.memory_space<vmem>>, vector<8x32xf32>,
    %c4_i32 = arith.constant 4 : i32
    %c8_i32_32 = arith.constant 8 : i32
    %111 = arith.muli %c4_i32, %c8_i32_32 : i32
    %112 = tpu.assume_multiple %111, 8 : i32
    %113 = arith.index_cast %112 : i32 to index
    %c0_33 = arith.constant 0 : index
    %114 = vector.load %arg8[%113, %c0_33] : memref<64x128xf32, #tpu.memory_space<vmem>>, vector<8x128xf32>
    %cst_34 = arith.constant dense<0.000000e+00> : vector<8x128xf32>
    %115 = tpu.matmul %108, %16, %cst_34 {dimension_numbers = #tpu.dot_dimension_numbers<[1], [0], [0], [1], [0, 0, 1, 1], [], []>} : vector<8x32xf32>, vector<32x128xf32>, vector<8x128xf32> -> vector<8x128xf32>
    %116 = arith.addf %114, %115 : vector<8x128xf32>
    %117 = arith.negf %116 : vector<8x128xf32>
    %118 = math.exp %117 : vector<8x128xf32>
    %cst_35 = arith.constant 1.000000e+00 : f32
    %119 = vector.broadcast %cst_35 : f32 to vector<8x128xf32>
    %120 = arith.addf %119, %118 : vector<8x128xf32>
    %121 = arith.divf %119, %120 : vector<8x128xf32>
    %122 = vector.extract_strided_slice %121 {offsets = [0, 0], sizes = [8, 32], strides = [1, 1]} : vector<8x128xf32> to vector<8x32xf32>
    %123 = vector.extract_strided_slice %121 {offsets = [0, 32], sizes = [8, 32], strides = [1, 1]} : vector<8x128xf32> to vector<8x32xf32>
    %124 = vector.extract_strided_slice %121 {offsets = [0, 64], sizes = [8, 32], strides = [1, 1]} : vector<8x128xf32> to vector<8x32xf32>
    %125 = vector.extract_strided_slice %116 {offsets = [0, 96], sizes = [8, 32], strides = [1, 1]} : vector<8x128xf32> to vector<8x32xf32>
    %126 = math.tanh %125 : vector<8x32xf32>
    %127 = arith.mulf %123, %106 : vector<8x32xf32>
    %128 = arith.mulf %122, %126 : vector<8x32xf32>
    %129 = arith.addf %127, %128 : vector<8x32xf32>
    %130 = math.tanh %129 : vector<8x32xf32>
    %131 = arith.mulf %124, %130 : vector<8x32xf32>
    %132 = arith.index_cast %112 : i32 to index
    %c0_36 = arith.constant 0 : index
    %133 = vector.load %arg7[%132, %c0_36] : memref<64x32xf32, #tpu.memory_space<vmem>>, vector<8x32xf32>
    tpu.vector_store %arg7[%132, %c0_36], %131 {strides = array<i32>} : memref<64x32xf32, #tpu.memory_space<vmem>>, vector<8x32xf32>,
    %c5_i32 = arith.constant 5 : i32
    %c8_i32_37 = arith.constant 8 : i32
    %134 = arith.muli %c5_i32, %c8_i32_37 : i32
    %135 = tpu.assume_multiple %134, 8 : i32
    %136 = arith.index_cast %135 : i32 to index
    %c0_38 = arith.constant 0 : index
    %137 = vector.load %arg8[%136, %c0_38] : memref<64x128xf32, #tpu.memory_space<vmem>>, vector<8x128xf32>
    %cst_39 = arith.constant dense<0.000000e+00> : vector<8x128xf32>
    %138 = tpu.matmul %131, %16, %cst_39 {dimension_numbers = #tpu.dot_dimension_numbers<[1], [0], [0], [1], [0, 0, 1, 1], [], []>} : vector<8x32xf32>, vector<32x128xf32>, vector<8x128xf32> -> vector<8x128xf32>
    %139 = arith.addf %137, %138 : vector<8x128xf32>
    %140 = arith.negf %139 : vector<8x128xf32>
    %141 = math.exp %140 : vector<8x128xf32>
    %cst_40 = arith.constant 1.000000e+00 : f32
    %142 = vector.broadcast %cst_40 : f32 to vector<8x128xf32>
    %143 = arith.addf %142, %141 : vector<8x128xf32>
    %144 = arith.divf %142, %143 : vector<8x128xf32>
    %145 = vector.extract_strided_slice %144 {offsets = [0, 0], sizes = [8, 32], strides = [1, 1]} : vector<8x128xf32> to vector<8x32xf32>
    %146 = vector.extract_strided_slice %144 {offsets = [0, 32], sizes = [8, 32], strides = [1, 1]} : vector<8x128xf32> to vector<8x32xf32>
    %147 = vector.extract_strided_slice %144 {offsets = [0, 64], sizes = [8, 32], strides = [1, 1]} : vector<8x128xf32> to vector<8x32xf32>
    %148 = vector.extract_strided_slice %139 {offsets = [0, 96], sizes = [8, 32], strides = [1, 1]} : vector<8x128xf32> to vector<8x32xf32>
    %149 = math.tanh %148 : vector<8x32xf32>
    %150 = arith.mulf %146, %129 : vector<8x32xf32>
    %151 = arith.mulf %145, %149 : vector<8x32xf32>
    %152 = arith.addf %150, %151 : vector<8x32xf32>
    %153 = math.tanh %152 : vector<8x32xf32>
    %154 = arith.mulf %147, %153 : vector<8x32xf32>
    %155 = arith.index_cast %135 : i32 to index
    %c0_41 = arith.constant 0 : index
    %156 = vector.load %arg7[%155, %c0_41] : memref<64x32xf32, #tpu.memory_space<vmem>>, vector<8x32xf32>
    tpu.vector_store %arg7[%155, %c0_41], %154 {strides = array<i32>} : memref<64x32xf32, #tpu.memory_space<vmem>>, vector<8x32xf32>,
    %c6_i32 = arith.constant 6 : i32
    %c8_i32_42 = arith.constant 8 : i32
    %157 = arith.muli %c6_i32, %c8_i32_42 : i32
    %158 = tpu.assume_multiple %157, 8 : i32
    %159 = arith.index_cast %158 : i32 to index
    %c0_43 = arith.constant 0 : index
    %160 = vector.load %arg8[%159, %c0_43] : memref<64x128xf32, #tpu.memory_space<vmem>>, vector<8x128xf32>
    %cst_44 = arith.constant dense<0.000000e+00> : vector<8x128xf32>
    %161 = tpu.matmul %154, %16, %cst_44 {dimension_numbers = #tpu.dot_dimension_numbers<[1], [0], [0], [1], [0, 0, 1, 1], [], []>} : vector<8x32xf32>, vector<32x128xf32>, vector<8x128xf32> -> vector<8x128xf32>
    %162 = arith.addf %160, %161 : vector<8x128xf32>
    %163 = arith.negf %162 : vector<8x128xf32>
    %164 = math.exp %163 : vector<8x128xf32>
    %cst_45 = arith.constant 1.000000e+00 : f32
    %165 = vector.broadcast %cst_45 : f32 to vector<8x128xf32>
    %166 = arith.addf %165, %164 : vector<8x128xf32>
    %167 = arith.divf %165, %166 : vector<8x128xf32>
    %168 = vector.extract_strided_slice %167 {offsets = [0, 0], sizes = [8, 32], strides = [1, 1]} : vector<8x128xf32> to vector<8x32xf32>
    %169 = vector.extract_strided_slice %167 {offsets = [0, 32], sizes = [8, 32], strides = [1, 1]} : vector<8x128xf32> to vector<8x32xf32>
    %170 = vector.extract_strided_slice %167 {offsets = [0, 64], sizes = [8, 32], strides = [1, 1]} : vector<8x128xf32> to vector<8x32xf32>
    %171 = vector.extract_strided_slice %162 {offsets = [0, 96], sizes = [8, 32], strides = [1, 1]} : vector<8x128xf32> to vector<8x32xf32>
    %172 = math.tanh %171 : vector<8x32xf32>
    %173 = arith.mulf %169, %152 : vector<8x32xf32>
    %174 = arith.mulf %168, %172 : vector<8x32xf32>
    %175 = arith.addf %173, %174 : vector<8x32xf32>
    %176 = math.tanh %175 : vector<8x32xf32>
    %177 = arith.mulf %170, %176 : vector<8x32xf32>
    %178 = arith.index_cast %158 : i32 to index
    %c0_46 = arith.constant 0 : index
    %179 = vector.load %arg7[%178, %c0_46] : memref<64x32xf32, #tpu.memory_space<vmem>>, vector<8x32xf32>
    tpu.vector_store %arg7[%178, %c0_46], %177 {strides = array<i32>} : memref<64x32xf32, #tpu.memory_space<vmem>>, vector<8x32xf32>,
    %c7_i32 = arith.constant 7 : i32
    %c8_i32_47 = arith.constant 8 : i32
    %180 = arith.muli %c7_i32, %c8_i32_47 : i32
    %181 = tpu.assume_multiple %180, 8 : i32
    %182 = arith.index_cast %181 : i32 to index
    %c0_48 = arith.constant 0 : index
    %183 = vector.load %arg8[%182, %c0_48] : memref<64x128xf32, #tpu.memory_space<vmem>>, vector<8x128xf32>
    %cst_49 = arith.constant dense<0.000000e+00> : vector<8x128xf32>
    %184 = tpu.matmul %177, %16, %cst_49 {dimension_numbers = #tpu.dot_dimension_numbers<[1], [0], [0], [1], [0, 0, 1, 1], [], []>} : vector<8x32xf32>, vector<32x128xf32>, vector<8x128xf32> -> vector<8x128xf32>
    %185 = arith.addf %183, %184 : vector<8x128xf32>
    %186 = arith.negf %185 : vector<8x128xf32>
    %187 = math.exp %186 : vector<8x128xf32>
    %cst_50 = arith.constant 1.000000e+00 : f32
    %188 = vector.broadcast %cst_50 : f32 to vector<8x128xf32>
    %189 = arith.addf %188, %187 : vector<8x128xf32>
    %190 = arith.divf %188, %189 : vector<8x128xf32>
    %191 = vector.extract_strided_slice %190 {offsets = [0, 0], sizes = [8, 32], strides = [1, 1]} : vector<8x128xf32> to vector<8x32xf32>
    %192 = vector.extract_strided_slice %190 {offsets = [0, 32], sizes = [8, 32], strides = [1, 1]} : vector<8x128xf32> to vector<8x32xf32>
    %193 = vector.extract_strided_slice %190 {offsets = [0, 64], sizes = [8, 32], strides = [1, 1]} : vector<8x128xf32> to vector<8x32xf32>
    %194 = vector.extract_strided_slice %185 {offsets = [0, 96], sizes = [8, 32], strides = [1, 1]} : vector<8x128xf32> to vector<8x32xf32>
    %195 = math.tanh %194 : vector<8x32xf32>
    %196 = arith.mulf %192, %175 : vector<8x32xf32>
    %197 = arith.mulf %191, %195 : vector<8x32xf32>
    %198 = arith.addf %196, %197 : vector<8x32xf32>
    %199 = math.tanh %198 : vector<8x32xf32>
    %200 = arith.mulf %193, %199 : vector<8x32xf32>
    %201 = arith.index_cast %181 : i32 to index
    %c0_51 = arith.constant 0 : index
    %202 = vector.load %arg7[%201, %c0_51] : memref<64x32xf32, #tpu.memory_space<vmem>>, vector<8x32xf32>
    tpu.vector_store %arg7[%201, %c0_51], %200 {strides = array<i32>} : memref<64x32xf32, #tpu.memory_space<vmem>>, vector<8x32xf32>,
    %c8_i32_52 = arith.constant 8 : i32
    %c0_53 = arith.constant 0 : index
    %c0_54 = arith.constant 0 : index
    %c0_55 = arith.constant 0 : index
    %203 = vector.load %arg5[%c0_53, %c0_54, %c0_55] : memref<1x8x32xf32, #tpu.memory_space<vmem>>, vector<1x8x32xf32>
    %204 = vector.shape_cast %203 : vector<1x8x32xf32> to vector<8x32xf32>
    %205 = vector.shape_cast %200 : vector<8x32xf32> to vector<1x8x32xf32>
    tpu.vector_store %arg5[%c0_53, %c0_54, %c0_55], %205 {strides = array<i32>} : memref<1x8x32xf32, #tpu.memory_space<vmem>>, vector<1x8x32xf32>,
    %c0_56 = arith.constant 0 : index
    %c0_57 = arith.constant 0 : index
    %c0_58 = arith.constant 0 : index
    %206 = vector.load %arg6[%c0_56, %c0_57, %c0_58] : memref<1x8x32xf32, #tpu.memory_space<vmem>>, vector<1x8x32xf32>
    %207 = vector.shape_cast %206 : vector<1x8x32xf32> to vector<8x32xf32>
    %208 = vector.shape_cast %198 : vector<8x32xf32> to vector<1x8x32xf32>
    tpu.vector_store %arg6[%c0_56, %c0_57, %c0_58], %208 {strides = array<i32>} : memref<1x8x32xf32, #tpu.memory_space<vmem>>, vector<1x8x32xf32>,
    return
  }
  func.func @transform_0(%arg0: i32) -> (i32, i32) {
    %c0_i32 = arith.constant 0 : i32
    %c0_i32_0 = arith.constant 0 : i32
    %c0_i32_1 = arith.constant 0 : i32
    return %c0_i32, %c0_i32_0 : i32, i32
  }
  func.func @transform_1(%arg0: i32) -> (i32, i32, i32) {
    %c0_i32 = arith.constant 0 : i32
    %c0_i32_0 = arith.constant 0 : i32
    %c0_i32_1 = arith.constant 0 : i32
    %c0_i32_2 = arith.constant 0 : i32
    return %c0_i32, %c0_i32_0, %c0_i32_1 : i32, i32, i32
  }
  func.func @transform_2(%arg0: i32) -> (i32, i32, i32) {
    %c0_i32 = arith.constant 0 : i32
    %c0_i32_0 = arith.constant 0 : i32
    %c0_i32_1 = arith.constant 0 : i32
    %c0_i32_2 = arith.constant 0 : i32
    return %c0_i32, %c0_i32_0, %c0_i32_1 : i32, i32, i32
  }
  func.func @transform_3(%arg0: i32) -> (i32, i32, i32) {
    %c0_i32 = arith.constant 0 : i32
    %c0_i32_0 = arith.constant 0 : i32
    %c0_i32_1 = arith.constant 0 : i32
    %c0_i32_2 = arith.constant 0 : i32
    return %c0_i32, %c0_i32_0, %c0_i32_1 : i32, i32, i32
  }
  func.func @transform_4(%arg0: i32) -> (i32, i32, i32) {
    %c0_i32 = arith.constant 0 : i32
    %c0_i32_0 = arith.constant 0 : i32
    %c0_i32_1 = arith.constant 0 : i32
    return %arg0, %c0_i32, %c0_i32_0 : i32, i32, i32
  }
  func.func @transform_5(%arg0: i32) -> (i32, i32, i32) {
    %c0_i32 = arith.constant 0 : i32
    %c0_i32_0 = arith.constant 0 : i32
    %c0_i32_1 = arith.constant 0 : i32
    return %arg0, %c0_i32, %c0_i32_0 : i32, i32, i32
  }
}

</mosaic_0001>

<bundles_post_ra>
// kernel: byte_encoder_forward.1
= control target key start
LH: loop header
LB: loop body
LE: loop exit
PB: predicated region body
PF: predicated region fallthrough
CT: control target
= control target key end

     0   :  { %s1636_s18 = smov 0   ;;  %s1867_s0 = inlined_call_operand.vmem [shape: f32[64,32], index: 0, kind: input, shape index: {}]   ;;  %s1868_s1 = inlined_call_operand.vmem [shape: f32[2,32,128], index: 1, kind: input, shape index: {}]   ;;  %s1869_s2 = inlined_call_operand.vmem [shape: f32[2,32,128], index: 2, kind: input, shape index: {}]   ;;  %s1870_s3 = inlined_call_operand.vmem [shape: f32[2,1,128], index: 3, kind: input, shape index: {}]   ;;  %s1871_s4 = inlined_call_operand.vmem [shape: f32[2,8,32], index: 4, kind: output, shape index: {0}]   ;;  %s1872_s5 = inlined_call_operand.vmem [shape: f32[2,8,32], index: 5, kind: output, shape index: {1}]  }
   0x1 LB: > { %s1642_s19 = sadd.s32 4294967295, %s1599_s18   ;;  %p1325_p0 = scmp.ge.s32.totalorder %s1599_s18, 1  ;;  %s1599_s18 = sphi %s1636_s18, %s16_s18  }
   0x2   : > { %p180_p1 = scmp.lt.s32.totalorder %s1599_s18, 3 }
   0x4   : > { %p181_p2 = pnand %p1325_p0, %p180_p1 }
   0x5   : > { %p206_p3 = scmp.lt.s32.totalorder (!%p181_p2), %s1642_s19, 1  ;;  %p1328_p4 = scmp.ne.s32.totalorder (!%p181_p2), %s1642_s19, 0 }
   0x6   : > { %184 = sbr.rel (%p181_p2) target bundleno = 5550 (0x15ae), region = 36 }
   0xb   : > { %s207_s20 = scalar_select %p206_p3, %s1642_s19, 1 }
   0xc   : > { %217 = sbr.rel (%p1328_p4) target bundleno = 22 (0x16), region = 40 }
   0xd   : > { %s1326_s21 = sshll.u32 %s207_s20, 3 }
   0xe   : > { %s1651_s24 = scalar_lea.vmem %s1871_s4, %s1326_s21  ;;  %s1656_s27 = scalar_lea.vmem %s1872_s5, %s1326_s21 }
  0x11   : > { %v218_v0 = vld [vmem:[%s1867_s0] sm:$0xff]  ;;  %vm226_vm0 = vcmask 261120   ;;  %v219_v1 = vld [vmem:[%s1867_s0 + $0x8] sm:$0xff]  ;;  %v220_v2 = vld [vmem:[%s1867_s0 + $0x10] sm:$0xff] }
  0x12   : > { %227 = vst.msk [vmem:[#allocation2] sm:$0xff] %vm226_vm0, %v218_v0  ;;  %228 = vst.msk [vmem:[#allocation2 + $0x8] sm:$0xff] %vm226_vm0, %v219_v1  ;;  %v221_v3 = vld [vmem:[%s1867_s0 + $0x18] sm:$0xff]  ;;  %v222_v4 = vld [vmem:[%s1867_s0 + $0x20] sm:$0xff] }
  0x13   : > { %229 = vst.msk [vmem:[#allocation2 + $0x10] sm:$0xff] %vm226_vm0, %v220_v2  ;;  %v223_v5 = vld [vmem:[%s1867_s0 + $0x28] sm:$0xff]  ;;  %230 = vst.msk [vmem:[#allocation2 + $0x18] sm:$0xff] %vm226_vm0, %v221_v3  ;;  %v224_v6 = vld [vmem:[%s1867_s0 + $0x30] sm:$0xff] }
  0x14   : > { %231 = vst.msk [vmem:[#allocation2 + $0x20] sm:$0xff] %vm226_vm0, %v222_v4  ;;  %232 = vst.msk [vmem:[#allocation2 + $0x28] sm:$0xff] %vm226_vm0, %v223_v5  ;;  %v225_v7 = vld [vmem:[%s1867_s0 + $0x38] sm:$0xff] }
  0x15   : > { %233 = vst.msk [vmem:[#allocation2 + $0x30] sm:$0xff] %vm226_vm0, %v224_v6  ;;  %234 = vst.msk [vmem:[#allocation2 + $0x38] sm:$0xff] %vm226_vm0, %v225_v7 }
  0x16 PF: > { %s1329_s21 = sshll.u32 %s1642_s19, 5  ;;  %vm257_vm1 = vcmask 261120   ;;  %v1601_v9 = vmov 0.0   ;;  %vm1602_vm2 = vmmov 0   ;;  %s249_s7 = scalar_lea.vmem %s1870_s3, %s1642_s19 }
  0x17   : > { %s244_s25 = scalar_lea.vmem %s1868_s1, %s1329_s21  ;;  %s395_s29 = scalar_lea.vmem %s1869_s2, %s1329_s21  ;;  %1428 = vmatprep.subr.mxu1 %v1601_v9  ;;  %1436 = vmatprep.mubr.msk.f32.mxu1 %vm1602_vm2, %v1601_v9  ;;  %v1735_v21 = vld [vmem:[%s249_s7] ss:$0 sm:$0xff] }
  0x18   : > { %v248_v10 = vld [vmem:[%s244_s25 + $0x18] sm:$0xff]  ;;  %v1694_v11 = vld [vmem:[%s395_s29 + $0x10] sm:$0xff]  ;;  %v246_v14 = vld [vmem:[%s244_s25 + $0x8] sm:$0xff]  ;;  %s1603_s8 = smov 32   ;;  %s1604_s19 = smov 64  }
  0x19   : > { %v235_v8 = vld [vmem:[#allocation2] sm:$0xff]  ;;  %1408 = vmatprep.subr.mxu0 %v248_v10  ;;  %v1696_v12 = vld [vmem:[%s395_s29 + $0x18] sm:$0xff]  ;;  %v247_v13 = vld [vmem:[%s244_s25 + $0x10] sm:$0xff]  ;;  %s1605_s9 = smov 96  }
  0x1a   : > { %1416 = vmatprep.mubr.msk.f32.mxu0 %vm257_vm1, %v235_v8  ;;  %1409 = vmatpush3.msra.mxu0 %v248_v10  ;;  %v1699_v15 = vld [vmem:[%s395_s29 + $0x8] sm:$0xff]  ;;  %v245_v16 = vld [vmem:[%s244_s25] sm:$0xff]  ;;  %v237_v54 = vld [vmem:[#allocation2 + $0x10] sm:$0xff] }
  0x1b   : > { %1429 = vmatpush3.msra.mxu1 %v1696_v12  ;;  %1410 = vmatprep.subr.mxu0 %v247_v13  ;;  %v1703_v17 = vld [vmem:[%s395_s29] sm:$0xff]  ;;  %v236_v18 = vld [vmem:[#allocation2 + $0x8] sm:$0xff]  ;;  %v238_v55 = vld [vmem:[#allocation2 + $0x18] sm:$0xff] }
  0x1c   : > { %1430 = vmatprep.subr.mxu1 %v1601_v9  ;;  %1411 = vmatpush3.msra.mxu0 %v247_v13  ;;  %v239_v56 = vld [vmem:[#allocation2 + $0x20] sm:$0xff]  ;;  %v240_v57 = vld [vmem:[#allocation2 + $0x28] sm:$0xff]  ;;  %v241_v58 = vld [vmem:[#allocation2 + $0x30] sm:$0xff] }
  0x1d   : > { %1431 = vmatpush3.msra.mxu1 %v1694_v11  ;;  %1412 = vmatprep.subr.mxu0 %v246_v14  ;;  %v242_v59 = vld [vmem:[#allocation2 + $0x38] sm:$0xff] }
  0x1e   : > { %1432 = vmatprep.subr.mxu1 %v1601_v9  ;;  %1413 = vmatpush3.msra.mxu0 %v246_v14 }
  0x1f   : > { %1433 = vmatpush3.msra.mxu1 %v1699_v15  ;;  %1414 = vmatprep.subr.mxu0 %v245_v16 }
  0x20   : > { %1434 = vmatprep.subr.mxu1 %v1601_v9  ;;  %1415 = vmatpush3.msra.mxu0 %v245_v16 }
  0x21   : > { %1435 = vmatpush3.msra.mxu1 %v1703_v17  ;;  %1417 = vmatmul.mubr.msk.f32.vlgmr.msra.gmra.mxu0 %vm257_vm1, %v236_v18 }
  0x22   : > { %1437 = vmatmul.mubr.f32.vlgmr.msra.gmra.mxu1 %v1601_v9  ;;  %1439 = vmatprep.subr.mxu1 %v1601_v9 }
  0x23   : > { %1447 = vmatprep.mubr.msk.f32.mxu1 %vm1602_vm2, %v1601_v9  ;;  %1440 = vmatpush3.msra.mxu1 %v1696_v12 }
  0x24   : > { %1450 = vmatprep.subr.mxu0 %v1601_v9  ;;  %1441 = vmatprep.subr.mxu1 %v1601_v9 }
  0x25   : > { %1451 = vmatpush3.msra.mxu0 %v1696_v12  ;;  %1442 = vmatpush3.msra.mxu1 %v1694_v11 }
  0x26   : > { %1452 = vmatprep.subr.mxu0 %v1601_v9  ;;  %1443 = vmatprep.subr.mxu1 %v1601_v9 }
  0x27   : > { %1453 = vmatpush3.msra.mxu0 %v1694_v11  ;;  %1444 = vmatpush3.msra.mxu1 %v1699_v15 }
  0x28   : > { %1454 = vmatprep.subr.mxu0 %v1601_v9  ;;  %1445 = vmatprep.subr.mxu1 %v1601_v9 }
  0x29   : > { %1455 = vmatpush3.msra.mxu0 %v1699_v15  ;;  %1446 = vmatpush3.msra.mxu1 %v1703_v17 }
  0x2a   : > { %1456 = vmatprep.subr.mxu0 %v1601_v9  ;;  %1461 = vmatprep.subr.mxu1 %v1601_v9 }
  0x2b   : > { %1457 = vmatpush3.msra.mxu0 %v1703_v17  ;;  %1419 = vmatprep.mubr.msk.f32.mxu0 %vm257_vm1, %v237_v54 }
  0x2c   : > { %1472 = vmatprep.subr.mxu0 %v1601_v9  ;;  %1420 = vmatmul.mubr.msk.f32.gmra.mxu0 %vm257_vm1, %v238_v55 }
  0x2d   : > { %1422 = vmatprep.mubr.msk.f32.mxu0 %vm257_vm1, %v239_v56 }
  0x30   : > { %1423 = vmatmul.mubr.msk.f32.gmra.mxu0 %vm257_vm1, %v240_v57 }
  0x31   : > { %1425 = vmatprep.mubr.msk.f32.mxu0 %vm257_vm1, %v241_v58 }
  0x34   : > { %1426 = vmatmul.mubr.msk.f32.gmra.mxu0 %vm257_vm1, %v242_v59 }
  0x35   : > { %1458 = vmatprep.mubr.msk.f32.mxu0 %vm1602_vm2, %v1601_v9 }
  0xe1   : > { %v1418_v19 = vpop.f32.mrf.mxu0 }
  0xe2   : > { %v470_v20 = vpop.f32.mrf.mxu1  ;;  %v354_v40 = vadd.f32 %v1418_v19, %v1735_v21 }
  0xe3   : > { %v348_v22 = vpop.f32.mrf.mxu0 }
  0xe4   : > { %v1438_v23 = vpop.f32.mrf.mxu1  ;;  %v349_v24 = vadd.f32 %v1735_v21, %v348_v22 }
  0xe6   : > { %v474_v25 = vadd.f32 %v470_v20, %v349_v24 }
  0xe8   : > { %1529 = vtanh.f32 %v474_v25  ;;  %v1339_v27 = vmul.f32 -1.442695, %v474_v25 }
  0xea   : > { %1531 = vpow2.f32 %v1339_v27 }
  0xec   : > { %v1421_v0 = vpop.f32.mrf.mxu0 }
  0xee   : > { %v358_v1 = vpop.f32.mrf.mxu0 }
  0xef   : > { %v359_v6 = vadd.f32 %v1735_v21, %v358_v1 }
  0xf0   : > { %v1779_v2 = vpop.f32.mrf.mxu0 }
  0xf2   : > { %v1781_v3 = vpop.f32.mrf.mxu0 }
  0xf4   : > { %v1783_v4 = vpop.f32.mrf.mxu0 }
  0xf5   : > { %v1530_v26 = vpop.eup %1529 }
  0xf6   : > { %484 = vrot.lane.b32.xlu0 %v1530_v26, %s1603_s8  ;;  %v1785_v5 = vpop.f32.mrf.mxu0 }
  0xf7   : > { %v1532_v28 = vpop.eup %1531 }
  0xf8   : > { %v478_v29 = vadd.f32 1.0, %v1532_v28 }
  0xfa   : > { %1533 = vrcp.f32 %v478_v29 }
 0x107   : > { %v1534_v30 = vpop.eup %1533 }
 0x108   : > { %v482_v33 = vmul.f32 0.0, %v1534_v30 }
 0x168   : > { %v485_v31 = vpop.permute.xlu0 %484 }
 0x169   : > { %v487_v32 = vmul.f32 %v1534_v30, %v485_v31 }
 0x16b   : > { %489 = vrot.lane.b32.xlu0 %v487_v32, %s1603_s8 }
 0x1dd   : > { %v490_v34 = vpop.permute.xlu0 %489 }
 0x1de   : > { %v492_v35 = vadd.f32 %v490_v34, %v482_v33 }
 0x1e0   : > { %1535 = vtanh.f32 %v492_v35 }
 0x1ed   : > { %v1536_v36 = vpop.eup %1535 }
 0x1ee   : > { %495 = vrot.lane.b32.xlu1 %v1536_v36, %s1603_s8 }
 0x260   : > { %v496_v37 = vpop.permute.xlu1 %495 }
 0x261   : > { %v498_v38 = vmul.f32 %v1534_v30, %v496_v37  ;;  %v364_v30 = vadd.f32 %v1421_v0, %v1735_v21 }
 0x263   : > { %500 = vrot.lane.b32.xlu1 %v498_v38, %s1604_s19 }
 0x2d5   : > { %v501_v39 = vpop.permute.xlu1 %500 }
 0x2d6   : > { %503 = vst.msk [vmem:[#allocation2] sm:$0xff] %vm257_vm1, %v501_v39  ;;  %1448 = vmatmul.mubr.msk.f32.vlgmr.msra.gmra.mxu1 %vm257_vm1, %v501_v39 }
 0x2d7   : > { %1462 = vmatpush3.msra.mxu1 %v1696_v12  ;;  %1469 = vmatprep.mubr.msk.f32.mxu1 %vm1602_vm2, %v1601_v9 }
 0x2d8   : > { %1463 = vmatprep.subr.mxu1 %v1601_v9 }
 0x2d9   : > { %1464 = vmatpush3.msra.mxu1 %v1694_v11 }
 0x2da   : > { %1465 = vmatprep.subr.mxu1 %v1601_v9 }
 0x2db   : > { %1466 = vmatpush3.msra.mxu1 %v1699_v15 }
 0x2dc   : > { %1467 = vmatprep.subr.mxu1 %v1601_v9 }
 0x2dd   : > { %1468 = vmatpush3.msra.mxu1 %v1703_v17 }
 0x2de   : > { %1483 = vmatprep.subr.mxu1 %v1601_v9 }
 0x396   : > { %v574_v41 = vpop.f32.mrf.mxu1 }
 0x397   : > { %v578_v42 = vadd.f32 %v574_v41, %v354_v40 }
 0x398   : > { %v1449_v43 = vpop.f32.mrf.mxu1 }
 0x399   : > { %1537 = vtanh.f32 %v578_v42  ;;  %v1341_v45 = vmul.f32 -1.442695, %v578_v42 }
 0x39b   : > { %1539 = vpow2.f32 %v1341_v45 }
 0x3a6   : > { %v1538_v44 = vpop.eup %1537 }
 0x3a7   : > { %588 = vrot.lane.b32.xlu0 %v1538_v44, %s1603_s8 }
 0x3a8   : > { %v1540_v46 = vpop.eup %1539 }
 0x3a9   : > { %v582_v47 = vadd.f32 1.0, %v1540_v46 }
 0x3ab   : > { %1541 = vrcp.f32 %v582_v47 }
 0x3b8   : > { %v1542_v48 = vpop.eup %1541 }
 0x3b9   : > { %v586_v51 = vmul.f32 %v1542_v48, %v492_v35 }
 0x419   : > { %v589_v49 = vpop.permute.xlu0 %588 }
 0x41a   : > { %v591_v50 = vmul.f32 %v1542_v48, %v589_v49 }
 0x41c   : > { %593 = vrot.lane.b32.xlu1 %v591_v50, %s1603_s8 }
 0x48e   : > { %v594_v52 = vpop.permute.xlu1 %593 }
 0x48f   : > { %v596_v53 = vadd.f32 %v594_v52, %v586_v51 }
 0x491   : > { %1543 = vtanh.f32 %v596_v53 }
 0x49e   : > { %v1544_v60 = vpop.eup %1543 }
 0x49f   : > { %599 = vrot.lane.b32.xlu0 %v1544_v60, %s1603_s8 }
 0x511   : > { %v600_v61 = vpop.permute.xlu0 %599 }
 0x512   : > { %v602_v62 = vmul.f32 %v1542_v48, %v600_v61  ;;  %v369_v48 = vadd.f32 %v1735_v21, %v1781_v3  ;;  %v374_v3 = vadd.f32 %v1779_v2, %v1735_v21 }
 0x514   : > { %604 = vrot.lane.b32.xlu1 %v602_v62, %s1604_s19 }
 0x586   : > { %v605_v63 = vpop.permute.xlu1 %604 }
 0x587   : > { %608 = vst.msk [vmem:[#allocation2 + $0x8] sm:$0xff] %vm257_vm1, %v605_v63  ;;  %1459 = vmatmul.mubr.msk.f32.vlgmr.msra.gmra.mxu0 %vm257_vm1, %v605_v63 }
 0x588   : > { %1473 = vmatpush3.msra.mxu0 %v1696_v12  ;;  %1480 = vmatprep.mubr.msk.f32.mxu0 %vm1602_vm2, %v1601_v9 }
 0x589   : > { %1474 = vmatprep.subr.mxu0 %v1601_v9 }
 0x58a   : > { %1475 = vmatpush3.msra.mxu0 %v1694_v11 }
 0x58b   : > { %1476 = vmatprep.subr.mxu0 %v1601_v9 }
 0x58c   : > { %1477 = vmatpush3.msra.mxu0 %v1699_v15 }
 0x58d   : > { %1478 = vmatprep.subr.mxu0 %v1601_v9 }
 0x58e   : > { %1479 = vmatpush3.msra.mxu0 %v1703_v17 }
 0x58f   : > { %1494 = vmatprep.subr.mxu0 %v1601_v9 }
 0x647   : > { %v679_v7 = vpop.f32.mrf.mxu0 }
 0x648   : > { %v683_v8 = vadd.f32 %v679_v7, %v359_v6 }
 0x649   : > { %v1460_v10 = vpop.f32.mrf.mxu0 }
 0x64a   : > { %1545 = vtanh.f32 %v683_v8  ;;  %v1343_v14 = vmul.f32 -1.442695, %v683_v8 }
 0x64c   : > { %1547 = vpow2.f32 %v1343_v14 }
 0x657   : > { %v1546_v13 = vpop.eup %1545 }
 0x658   : > { %693 = vrot.lane.b32.xlu0 %v1546_v13, %s1603_s8 }
 0x659   : > { %v1548_v16 = vpop.eup %1547 }
 0x65a   : > { %v687_v18 = vadd.f32 1.0, %v1548_v16 }
 0x65c   : > { %1549 = vrcp.f32 %v687_v18 }
 0x669   : > { %v1550_v19 = vpop.eup %1549 }
 0x66a   : > { %v691_v23 = vmul.f32 %v1550_v19, %v596_v53 }
 0x6ca   : > { %v694_v20 = vpop.permute.xlu0 %693 }
 0x6cb   : > { %v696_v22 = vmul.f32 %v1550_v19, %v694_v20 }
 0x6cd   : > { %698 = vrot.lane.b32.xlu1 %v696_v22, %s1603_s8 }
 0x73f   : > { %v699_v24 = vpop.permute.xlu1 %698 }
 0x740   : > { %v701_v25 = vadd.f32 %v699_v24, %v691_v23  ;;  %v379_v23 = vadd.f32 %v1735_v21, %v1785_v5 }
 0x742   : > { %1551 = vtanh.f32 %v701_v25 }
 0x74f   : > { %v1552_v26 = vpop.eup %1551 }
 0x750   : > { %704 = vrot.lane.b32.xlu0 %v1552_v26, %s1603_s8 }
 0x7c2   : > { %v705_v27 = vpop.permute.xlu0 %704 }
 0x7c3   : > { %v707_v28 = vmul.f32 %v1550_v19, %v705_v27 }
 0x7c5   : > { %709 = vrot.lane.b32.xlu1 %v707_v28, %s1604_s19 }
 0x837   : > { %v710_v29 = vpop.permute.xlu1 %709 }
 0x838   : > { %713 = vst.msk [vmem:[#allocation2 + $0x10] sm:$0xff] %vm257_vm1, %v710_v29  ;;  %1470 = vmatmul.mubr.msk.f32.vlgmr.msra.gmra.mxu1 %vm257_vm1, %v710_v29 }
 0x839   : > { %1484 = vmatpush3.msra.mxu1 %v1696_v12  ;;  %1491 = vmatprep.mubr.msk.f32.mxu1 %vm1602_vm2, %v1601_v9 }
 0x83a   : > { %1485 = vmatprep.subr.mxu1 %v1601_v9 }
 0x83b   : > { %1486 = vmatpush3.msra.mxu1 %v1694_v11 }
 0x83c   : > { %1487 = vmatprep.subr.mxu1 %v1601_v9 }
 0x83d   : > { %1488 = vmatpush3.msra.mxu1 %v1699_v15 }
 0x83e   : > { %1489 = vmatprep.subr.mxu1 %v1601_v9 }
 0x83f   : > { %1490 = vmatpush3.msra.mxu1 %v1703_v17 }
 0x840   : > { %1505 = vmatprep.subr.mxu1 %v1601_v9 }
 0x8f8   : > { %v784_v31 = vpop.f32.mrf.mxu1 }
 0x8f9   : > { %v788_v32 = vadd.f32 %v784_v31, %v364_v30 }
 0x8fa   : > { %v1471_v33 = vpop.f32.mrf.mxu1 }
 0x8fb   : > { %1553 = vtanh.f32 %v788_v32  ;;  %v1345_v35 = vmul.f32 -1.442695, %v788_v32 }
 0x8fd   : > { %1555 = vpow2.f32 %v1345_v35 }
 0x908   : > { %v1554_v34 = vpop.eup %1553 }
 0x909   : > { %798 = vrot.lane.b32.xlu0 %v1554_v34, %s1603_s8 }
 0x90a   : > { %v1556_v36 = vpop.eup %1555 }
 0x90b   : > { %v792_v37 = vadd.f32 1.0, %v1556_v36 }
 0x90d   : > { %1557 = vrcp.f32 %v792_v37 }
 0x91a   : > { %v1558_v38 = vpop.eup %1557 }
 0x91b   : > { %v796_v41 = vmul.f32 %v1558_v38, %v701_v25 }
 0x97b   : > { %v799_v39 = vpop.permute.xlu0 %798 }
 0x97c   : > { %v801_v40 = vmul.f32 %v1558_v38, %v799_v39 }
 0x97e   : > { %803 = vrot.lane.b32.xlu1 %v801_v40, %s1603_s8  ;;  %v384_v40 = vadd.f32 %v1783_v4, %v1735_v21 }
 0x9f0   : > { %v804_v42 = vpop.permute.xlu1 %803 }
 0x9f1   : > { %v806_v43 = vadd.f32 %v804_v42, %v796_v41 }
 0x9f3   : > { %1559 = vtanh.f32 %v806_v43 }
 0xa00   : > { %v1560_v44 = vpop.eup %1559 }
 0xa01   : > { %809 = vrot.lane.b32.xlu0 %v1560_v44, %s1603_s8 }
 0xa73   : > { %v810_v45 = vpop.permute.xlu0 %809 }
 0xa74   : > { %v812_v46 = vmul.f32 %v1558_v38, %v810_v45 }
 0xa76   : > { %814 = vrot.lane.b32.xlu1 %v812_v46, %s1604_s19 }
 0xae8   : > { %v815_v47 = vpop.permute.xlu1 %814 }
 0xae9   : > { %818 = vst.msk [vmem:[#allocation2 + $0x18] sm:$0xff] %vm257_vm1, %v815_v47  ;;  %1481 = vmatmul.mubr.msk.f32.vlgmr.msra.gmra.mxu0 %vm257_vm1, %v815_v47 }
 0xaea   : > { %1495 = vmatpush3.msra.mxu0 %v1696_v12  ;;  %1502 = vmatprep.mubr.msk.f32.mxu0 %vm1602_vm2, %v1601_v9 }
 0xaeb   : > { %1496 = vmatprep.subr.mxu0 %v1601_v9 }
 0xaec   : > { %1497 = vmatpush3.msra.mxu0 %v1694_v11 }
 0xaed   : > { %1498 = vmatprep.subr.mxu0 %v1601_v9 }
 0xaee   : > { %1499 = vmatpush3.msra.mxu0 %v1699_v15 }
 0xaef   : > { %1500 = vmatprep.subr.mxu0 %v1601_v9 }
 0xaf0   : > { %1501 = vmatpush3.msra.mxu0 %v1703_v17 }
 0xba9   : > { %v889_v49 = vpop.f32.mrf.mxu0 }
 0xbaa   : > { %v893_v50 = vadd.f32 %v889_v49, %v369_v48 }
 0xbab   : > { %v1482_v51 = vpop.f32.mrf.mxu0 }
 0xbac   : > { %1561 = vtanh.f32 %v893_v50  ;;  %v1347_v53 = vmul.f32 -1.442695, %v893_v50 }
 0xbae   : > { %1563 = vpow2.f32 %v1347_v53 }
 0xbb9   : > { %v1562_v52 = vpop.eup %1561 }
 0xbba   : > { %903 = vrot.lane.b32.xlu0 %v1562_v52, %s1603_s8 }
 0xbbb   : > { %v1564_v54 = vpop.eup %1563 }
 0xbbc   : > { %v897_v55 = vadd.f32 1.0, %v1564_v54 }
 0xbbe   : > { %1565 = vrcp.f32 %v897_v55 }
 0xbcb   : > { %v1566_v56 = vpop.eup %1565 }
 0xbcc   : > { %v901_v59 = vmul.f32 %v1566_v56, %v806_v43 }
 0xc2c   : > { %v904_v57 = vpop.permute.xlu0 %903 }
 0xc2d   : > { %v906_v58 = vmul.f32 %v1566_v56, %v904_v57 }
 0xc2f   : > { %908 = vrot.lane.b32.xlu1 %v906_v58, %s1603_s8 }
 0xca1   : > { %v909_v60 = vpop.permute.xlu1 %908 }
 0xca2   : > { %v911_v61 = vadd.f32 %v909_v60, %v901_v59 }
 0xca4   : > { %1567 = vtanh.f32 %v911_v61 }
 0xcb1   : > { %v1568_v62 = vpop.eup %1567 }
 0xcb2   : > { %914 = vrot.lane.b32.xlu0 %v1568_v62, %s1603_s8 }
 0xd24   : > { %v915_v63 = vpop.permute.xlu0 %914 }
 0xd25   : > { %v917_v0 = vmul.f32 %v1566_v56, %v915_v63 }
 0xd27   : > { %919 = vrot.lane.b32.xlu1 %v917_v0, %s1604_s19 }
 0xd99   : > { %v920_v1 = vpop.permute.xlu1 %919 }
 0xd9a   : > { %923 = vst.msk [vmem:[#allocation2 + $0x20] sm:$0xff] %vm257_vm1, %v920_v1  ;;  %1492 = vmatmul.mubr.msk.f32.vlgmr.msra.gmra.mxu1 %vm257_vm1, %v920_v1 }
 0xd9b   : > { %1506 = vmatpush3.msra.mxu1 %v1696_v12  ;;  %1513 = vmatprep.mubr.msk.f32.mxu1 %vm1602_vm2, %v1601_v9 }
 0xd9c   : > { %1507 = vmatprep.subr.mxu1 %v1601_v9 }
 0xd9d   : > { %1508 = vmatpush3.msra.mxu1 %v1694_v11 }
 0xd9e   : > { %1509 = vmatprep.subr.mxu1 %v1601_v9 }
 0xd9f   : > { %1510 = vmatpush3.msra.mxu1 %v1699_v15 }
 0xda0   : > { %1511 = vmatprep.subr.mxu1 %v1601_v9 }
 0xda1   : > { %1512 = vmatpush3.msra.mxu1 %v1703_v17 }
 0xe5a   : > { %v994_v6 = vpop.f32.mrf.mxu1 }
 0xe5b   : > { %v998_v12 = vadd.f32 %v994_v6, %v374_v3 }
 0xe5c   : > { %v1493_v7 = vpop.f32.mrf.mxu1 }
 0xe5d   : > { %1569 = vtanh.f32 %v998_v12  ;;  %v1349_v10 = vmul.f32 -1.442695, %v998_v12 }
 0xe5f   : > { %1571 = vpow2.f32 %v1349_v10 }
 0xe6a   : > { %v1570_v8 = vpop.eup %1569 }
 0xe6b   : > { %1008 = vrot.lane.b32.xlu0 %v1570_v8, %s1603_s8 }
 0xe6c   : > { %v1572_v11 = vpop.eup %1571 }
 0xe6d   : > { %v1002_v13 = vadd.f32 1.0, %v1572_v11 }
 0xe6f   : > { %1573 = vrcp.f32 %v1002_v13 }
 0xe7c   : > { %v1574_v15 = vpop.eup %1573 }
 0xe7d   : > { %v1006_v17 = vmul.f32 %v1574_v15, %v911_v61 }
 0xedd   : > { %v1009_v14 = vpop.permute.xlu0 %1008 }
 0xede   : > { %v1011_v9 = vmul.f32 %v1574_v15, %v1009_v14 }
 0xee0   : > { %1013 = vrot.lane.b32.xlu1 %v1011_v9, %s1603_s8 }
 0xf52   : > { %v1014_v16 = vpop.permute.xlu1 %1013 }
 0xf53   : > { %v1016_v2 = vadd.f32 %v1014_v16, %v1006_v17 }
 0xf55   : > { %1575 = vtanh.f32 %v1016_v2 }
 0xf62   : > { %v1576_v18 = vpop.eup %1575 }
 0xf63   : > { %1019 = vrot.lane.b32.xlu0 %v1576_v18, %s1603_s8 }
 0xfd5   : > { %v1020_v19 = vpop.permute.xlu0 %1019 }
 0xfd6   : > { %v1022_v20 = vmul.f32 %v1574_v15, %v1020_v19 }
 0xfd8   : > { %1024 = vrot.lane.b32.xlu1 %v1022_v20, %s1604_s19 }
0x104a   : > { %v1025_v22 = vpop.permute.xlu1 %1024 }
0x104b   : > { %1028 = vst.msk [vmem:[#allocation2 + $0x28] sm:$0xff] %vm257_vm1, %v1025_v22  ;;  %1503 = vmatmul.mubr.msk.f32.vlgmr.msra.gmra.mxu0 %vm257_vm1, %v1025_v22 }
0x110b   : > { %v1099_v24 = vpop.f32.mrf.mxu0 }
0x110c   : > { %v1103_v25 = vadd.f32 %v1099_v24, %v379_v23 }
0x110d   : > { %v1504_v26 = vpop.f32.mrf.mxu0 }
0x110e   : > { %1577 = vtanh.f32 %v1103_v25  ;;  %v1351_v28 = vmul.f32 -1.442695, %v1103_v25 }
0x1110   : > { %1579 = vpow2.f32 %v1351_v28 }
0x111b   : > { %v1578_v27 = vpop.eup %1577 }
0x111c   : > { %1113 = vrot.lane.b32.xlu0 %v1578_v27, %s1603_s8 }
0x111d   : > { %v1580_v29 = vpop.eup %1579 }
0x111e   : > { %v1107_v30 = vadd.f32 1.0, %v1580_v29 }
0x1120   : > { %1581 = vrcp.f32 %v1107_v30 }
0x112d   : > { %v1582_v31 = vpop.eup %1581 }
0x112e   : > { %v1111_v34 = vmul.f32 %v1582_v31, %v1016_v2 }
0x118e   : > { %v1114_v32 = vpop.permute.xlu0 %1113 }
0x118f   : > { %v1116_v33 = vmul.f32 %v1582_v31, %v1114_v32 }
0x1191   : > { %1118 = vrot.lane.b32.xlu1 %v1116_v33, %s1603_s8 }
0x1203   : > { %v1119_v35 = vpop.permute.xlu1 %1118 }
0x1204   : > { %v1121_v5 = vadd.f32 %v1119_v35, %v1111_v34 }
0x1206   : > { %1583 = vtanh.f32 %v1121_v5 }
0x1213   : > { %v1584_v36 = vpop.eup %1583 }
0x1214   : > { %1124 = vrot.lane.b32.xlu0 %v1584_v36, %s1603_s8 }
0x1286   : > { %v1125_v37 = vpop.permute.xlu0 %1124 }
0x1287   : > { %v1127_v38 = vmul.f32 %v1582_v31, %v1125_v37 }
0x1289   : > { %1129 = vrot.lane.b32.xlu1 %v1127_v38, %s1604_s19 }
0x12fb   : > { %v1130_v39 = vpop.permute.xlu1 %1129 }
0x12fc   : > { %1133 = vst.msk [vmem:[#allocation2 + $0x30] sm:$0xff] %vm257_vm1, %v1130_v39  ;;  %1514 = vmatmul.mubr.msk.f32.vlgmr.msra.gmra.mxu1 %vm257_vm1, %v1130_v39 }
0x13bc   : > { %v1204_v41 = vpop.f32.mrf.mxu1 }
0x13bd   : > { %v1208_v42 = vadd.f32 %v1204_v41, %v384_v40 }
0x13be   : > { %v1515_v43 = vpop.f32.mrf.mxu1 }
0x13bf   : > { %1585 = vtanh.f32 %v1208_v42  ;;  %v1353_v45 = vmul.f32 -1.442695, %v1208_v42 }
0x13c1   : > { %1587 = vpow2.f32 %v1353_v45 }
0x13cc   : > { %v1586_v44 = vpop.eup %1585 }
0x13cd   : > { %1218 = vrot.lane.b32.xlu0 %v1586_v44, %s1603_s8 }
0x13ce   : > { %v1588_v46 = vpop.eup %1587 }
0x13cf   : > { %v1212_v47 = vadd.f32 1.0, %v1588_v46 }
0x13d1   : > { %1589 = vrcp.f32 %v1212_v47 }
0x13de   : > { %v1590_v48 = vpop.eup %1589 }
0x13df   : > { %v1216_v21 = vmul.f32 %v1590_v48, %v1121_v5 }
0x143f   : > { %v1219_v49 = vpop.permute.xlu0 %1218 }
0x1440   : > { %v1221_v50 = vmul.f32 %v1590_v48, %v1219_v49 }
0x1442   : > { %1223 = vrot.lane.b32.xlu1 %v1221_v50, %s1603_s8 }
0x14b4   : > { %v1224_v4 = vpop.permute.xlu1 %1223 }
0x14b5   : > { %v1226_v51 = vadd.f32 %v1224_v4, %v1216_v21 }
0x14b7   : > { %1591 = vtanh.f32 %v1226_v51 }
0x14c4   : > { %v1592_v52 = vpop.eup %1591 }
0x14c5   : > { %1229 = vrot.lane.b32.xlu0 %v1592_v52, %s1603_s8 }
0x14c9   : > { %1241 = vrot.lane.b32.xlu0 %v1226_v51, %s1605_s9 }
0x1537   : > { %v1230_v53 = vpop.permute.xlu0 %1229 }
0x1538   : > { %v1232_v54 = vmul.f32 %v1590_v48, %v1230_v53 }
0x153a   : > { %1234 = vrot.lane.b32.xlu1 %v1232_v54, %s1604_s19 }
0x153b   : > { %v1242_v55 = vpop.permute.xlu0 %1241 }
0x153c   : > { %1244 = vst.msk [vmem:[%s1656_s27] sm:$0xff] %vm257_vm1, %v1242_v55 }
0x15ac   : > { %v1235_v56 = vpop.permute.xlu1 %1234 }
0x15ad   : > { %1238 = vst.msk [vmem:[#allocation2 + $0x38] sm:$0xff] %vm257_vm1, %v1235_v56  ;;  %1239 = vst.msk [vmem:[%s1651_s24] sm:$0xff] %vm257_vm1, %v1235_v56 }
0x15ae PF: > { %s16_s18 = sadd.s32 1, %s1599_s18  }
0x15af   : > { %p13_p5 = scmp.ge.s32.totalorder %s16_s18, 4  }
0x15b1   :  { %15 = sbr.rel (!%p13_p5) target bundleno = 1 (0x1), region = 96 }

</bundles_post_ra>
